<compile_context>
chip_gen: v6e
topology: v6e:2x2x1
jax: 0.10.0
libtpu: 0.0.40
codegen_flags: <defaults>
</compile_context>

<pallas_src>
import functools

import numpy as np
import jax
import jax.numpy as jnp
from jax import lax
from jax.experimental import pallas as pl
from jax.experimental.pallas import tpu as pltpu

_INV_SQRT_2PI = float(1.0 / np.sqrt(2.0 * np.pi))
_INV_SQRT_2 = float(1.0 / np.sqrt(2.0))
_TINY = float(np.finfo(np.float32).tiny)

_LANES = 128
_TARGET_BLOCK_BYTES = 2 * 1024 * 1024   # ~2 MiB/block: 4 arrays x 2 bufs = 16 MiB live
_MIN_BLOCK_BYTES = 256 * 1024           # floor so per-step (~0.35us) overhead stays small
_MIN_STEPS = 8                          # >= 4 steps per TensorCore on v7x megacore
_VMEM_LIMIT_BYTES = 32 * 1024 * 1024    # > v5e 16 MiB scoped default, < v7x 64 MiB VMEM
_MAX_RAGGED_COLS = 4096                 # bound on the minor dim for the ragged path


def _adf_relu_kernel(mean_ref, var_ref, out_mean_ref, out_var_ref, *, min_variance):
    # f32 intermediates: v5e has no bf16 VPU/EUP path and out_var involves a
    # cancellation that is fragile in bf16.
    mean = mean_ref[...].astype(jnp.float32)
    var = var_ref[...].astype(jnp.float32)

    # One EUP rsqrt + two VPU muls instead of sqrt + divide. The max() guard
    # keeps var == 0 finite (stddev -> 0), matching the sqrt reference path.
    inv_std = lax.rsqrt(jnp.maximum(var, _TINY))
    stddev = var * inv_std
    div = mean * inv_std

    # Standard normal pdf / cdf (cdf via erf, matching normcdf in the reference).
    pdf = jnp.exp(-0.5 * div * div) * _INV_SQRT_2PI
    cdf = 0.5 * (1.0 + lax.erf(div * _INV_SQRT_2))

    out_mean = mean * cdf + stddev * pdf
    # == (mean^2 + var) * cdf + mean * stddev * pdf - out_mean^2
    out_var = out_mean * (mean - out_mean) + var * cdf
    if min_variance is not None:
        # Fused variance floor (the common keep_variance_fn = x + min_variance).
        out_var = out_var + jnp.float32(min_variance)

    out_mean_ref[...] = out_mean.astype(out_mean_ref.dtype)
    out_var_ref[...] = out_var.astype(out_var_ref.dtype)


def _choose_2d_view(shape, total):
    """Copy-free 2-D view (rows, cols) of a contiguous array of `total` elems."""
    if total % _LANES == 0:
        return total // _LANES, _LANES          # lane-dense fast path
    # Ragged: fold a suffix of the original dims into the minor axis. The minor
    # block dim then equals the full extent, which is always legal (no padding,
    # no extra HBM copies); Pallas masks the partial last row-block.
    cols = 1
    for d in reversed(shape):
        if cols * max(1, d) > _MAX_RAGGED_COLS:
            break
        cols *= max(1, d)
    cols = max(cols, 1)
    return total // cols, cols


def _pick_row_tile(rows, cols, itemsize):
    """Rows per block: byte-targeted cap, >= _MIN_STEPS steps when possible,
    even step count preferred (v7x TC balance), byte-based floor."""
    sub = max(8, 32 // max(1, itemsize))        # sublane granule: f32 8, bf16 16
    if rows <= sub:
        return rows                             # single full-extent block
    row_bytes = max(1, cols * itemsize)

    def rnd(x):
        return -(-x // sub) * sub

    cap = max(sub, (_TARGET_BLOCK_BYTES // row_bytes) // sub * sub)
    floor = max(sub, min(cap, (_MIN_BLOCK_BYTES // row_bytes) // sub * sub))

    tm = min(cap, rows)
    steps = pl.cdiv(rows, tm)
    if steps < _MIN_STEPS:
        tm = max(min(floor, tm), min(cap, rnd(pl.cdiv(rows, _MIN_STEPS))))
        steps = pl.cdiv(rows, tm)
    # Best effort: even step count so v7x's two TensorCores stay balanced.
    if steps > 1 and steps % 2 == 1:
        tm_even = rnd(pl.cdiv(rows, steps + 1))
        if sub <= tm_even <= tm:
            tm = tm_even
    return max(sub, min(tm, rows))


def adf_relu(features_mean, features_variance, *, min_variance=None,
             keep_variance_fn=None):
    """ADF ReLU forward. Inputs: arrays of identical shape/dtype (e.g. NCHW).

    `min_variance` (if given) is fused into the kernel as `out_var + min_variance`.
    `keep_variance_fn` (arbitrary callable) is applied after the kernel.
    """
    assert features_mean.shape == features_variance.shape
    orig_shape = features_mean.shape
    dtype = features_mean.dtype
    itemsize = jnp.dtype(dtype).itemsize

    total = int(np.prod(orig_shape)) if orig_shape else 1
    if total == 0:
        out_mean = jnp.zeros(orig_shape, dtype)
        out_var = jnp.zeros(orig_shape, dtype)
        if keep_variance_fn is not None:
            out_var = keep_variance_fn(out_var)
        return out_mean, out_var

    rows, cols = _choose_2d_view(orig_shape, total)
    m2d = features_mean.reshape(rows, cols)        # contiguous reshape: no copy
    v2d = features_variance.reshape(rows, cols)

    tm = _pick_row_tile(rows, cols, itemsize)
    grid = (pl.cdiv(rows, tm),)                    # partial last block is masked
    blk = pl.BlockSpec((tm, cols), lambda i: (i, 0))

    kernel = functools.partial(_adf_relu_kernel, min_variance=min_variance)

    out_mean2d, out_var2d = pl.pallas_call(
        kernel,
        out_shape=(
            jax.ShapeDtypeStruct((rows, cols), dtype),
            jax.ShapeDtypeStruct((rows, cols), dtype),
        ),
        grid=grid,
        in_specs=[blk, blk],
        out_specs=(blk, blk),
        compiler_params=pltpu.CompilerParams(
            dimension_semantics=("parallel",),
            vmem_limit_bytes=_VMEM_LIMIT_BYTES),
        cost_estimate=pl.CostEstimate(
            flops=10 * total,
            transcendentals=3 * total,
            bytes_accessed=4 * total * itemsize),
    )(m2d, v2d)

    out_mean = out_mean2d.reshape(orig_shape)
    out_var = out_var2d.reshape(orig_shape)

    if keep_variance_fn is not None:
        # TODO(synk): arbitrary keep_variance_fn callables cannot be fused into
        # the Pallas call; use `min_variance=` for the common additive floor.
        out_var = keep_variance_fn(out_var)
    return out_mean, out_var


def _adf_relu_ref(mean, var):
    """Pure-JAX reference mirroring the PyTorch module."""
    stddev = jnp.sqrt(var)
    div = mean / stddev
    pdf = jnp.exp(-0.5 * div * div) / np.sqrt(2.0 * np.pi)
    cdf = 0.5 * (1.0 + lax.erf(div / np.sqrt(2.0)))
    out_mean = mean * cdf + stddev * pdf
    out_var = (mean ** 2 + var) * cdf + mean * stddev * pdf - out_mean ** 2
    return out_mean, out_var


if __name__ == "__main__":
    key = jax.random.PRNGKey(0)
    k_mean, k_var = jax.random.split(key)

    # Small NCHW feature maps: batch=2, channels=4, spatial=16x16.
    shape = (2, 4, 16, 16)
    features_mean = jax.random.normal(k_mean, shape, dtype=jnp.float32)
    features_variance = jax.random.uniform(
        k_var, shape, dtype=jnp.float32, minval=0.1, maxval=2.0)

    out_mean, out_var = adf_relu(features_mean, features_variance)
    jax.block_until_ready((out_mean, out_var))

    ref_mean, ref_var = _adf_relu_ref(features_mean, features_variance)
    np.testing.assert_allclose(np.asarray(out_mean), np.asarray(ref_mean),
                               rtol=1e-5, atol=1e-5)
    np.testing.assert_allclose(np.asarray(out_var), np.asarray(ref_var),
                               rtol=1e-5, atol=1e-5)

    # Fused variance floor (keep_variance_fn = x + min_variance equivalent).
    om_f, ov_f = adf_relu(features_mean, features_variance, min_variance=1e-3)
    jax.block_until_ready((om_f, ov_f))
    np.testing.assert_allclose(np.asarray(om_f), np.asarray(ref_mean),
                               rtol=1e-5, atol=1e-5)
    np.testing.assert_allclose(np.asarray(ov_f), np.asarray(ref_var) + 1e-3,
                               rtol=1e-5, atol=1e-5)

    # Non-multiple-of-128 shape exercises the copy-free ragged path.
    shape2 = (3, 5, 7, 9)
    m2 = jax.random.normal(k_mean, shape2, dtype=jnp.float32)
    v2 = jax.random.uniform(k_var, shape2, dtype=jnp.float32,
                            minval=0.1, maxval=2.0)
    om2, ov2 = adf_relu(m2, v2)
    jax.block_until_ready((om2, ov2))
    rm2, rv2 = _adf_relu_ref(m2, v2)
    np.testing.assert_allclose(np.asarray(om2), np.asarray(rm2),
                               rtol=1e-5, atol=1e-5)
    np.testing.assert_allclose(np.asarray(ov2), np.asarray(rv2),
                               rtol=1e-5, atol=1e-5)

    print("KERNEL_OK")
</pallas_src>

<mosaic_0001>
module attributes {stable_mosaic.version = 11 : i64} {
  func.func @_adf_relu_kernel(%arg0: i32, %arg1: memref<16x128xf32, #tpu.memory_space<vmem>>, %arg2: memref<16x128xf32, #tpu.memory_space<vmem>>, %arg3: memref<16x128xf32, #tpu.memory_space<vmem>>, %arg4: memref<16x128xf32, #tpu.memory_space<vmem>>) attributes {dimension_semantics = [#tpu.dimension_semantics<parallel>], iteration_bounds = array<i64: 1>, scalar_prefetch = 0 : i64, scratch_operands = 0 : i64, tpu.core_type = #tpu.core_type<tc>, window_params = [{transform_indices = @transform_0, window_bounds = array<i64: 16, 128>}, {transform_indices = @transform_1, window_bounds = array<i64: 16, 128>}, {transform_indices = @transform_2, window_bounds = array<i64: 16, 128>}, {transform_indices = @transform_3, window_bounds = array<i64: 16, 128>}]} {
    %c0 = arith.constant 0 : index
    %c0_0 = arith.constant 0 : index
    %0 = vector.load %arg1[%c0, %c0_0] : memref<16x128xf32, #tpu.memory_space<vmem>>, vector<16x128xf32>
    %c0_1 = arith.constant 0 : index
    %c0_2 = arith.constant 0 : index
    %1 = vector.load %arg2[%c0_1, %c0_2] : memref<16x128xf32, #tpu.memory_space<vmem>>, vector<16x128xf32>
    %cst = arith.constant 1.17549435E-38 : f32
    %2 = vector.broadcast %cst : f32 to vector<16x128xf32>
    %3 = arith.maximumf %1, %2 : vector<16x128xf32>
    %4 = math.rsqrt %3 : vector<16x128xf32>
    %5 = arith.mulf %1, %4 : vector<16x128xf32>
    %6 = arith.mulf %0, %4 : vector<16x128xf32>
    %cst_3 = arith.constant -5.000000e-01 : f32
    %7 = vector.broadcast %cst_3 : f32 to vector<16x128xf32>
    %8 = arith.mulf %7, %6 : vector<16x128xf32>
    %9 = arith.mulf %8, %6 : vector<16x128xf32>
    %10 = math.exp %9 : vector<16x128xf32>
    %cst_4 = arith.constant 0.398942292 : f32
    %11 = vector.broadcast %cst_4 : f32 to vector<16x128xf32>
    %12 = arith.mulf %10, %11 : vector<16x128xf32>
    %cst_5 = arith.constant 0.707106769 : f32
    %13 = vector.broadcast %cst_5 : f32 to vector<16x128xf32>
    %14 = arith.mulf %6, %13 : vector<16x128xf32>
    %15 = math.erf %14 : vector<16x128xf32>
    %cst_6 = arith.constant 1.000000e+00 : f32
    %16 = vector.broadcast %cst_6 : f32 to vector<16x128xf32>
    %17 = arith.addf %16, %15 : vector<16x128xf32>
    %cst_7 = arith.constant 5.000000e-01 : f32
    %18 = vector.broadcast %cst_7 : f32 to vector<16x128xf32>
    %19 = arith.mulf %18, %17 : vector<16x128xf32>
    %20 = arith.mulf %0, %19 : vector<16x128xf32>
    %21 = arith.mulf %5, %12 : vector<16x128xf32>
    %22 = arith.addf %20, %21 : vector<16x128xf32>
    %23 = arith.subf %0, %22 : vector<16x128xf32>
    %24 = arith.mulf %22, %23 : vector<16x128xf32>
    %25 = arith.mulf %1, %19 : vector<16x128xf32>
    %26 = arith.addf %24, %25 : vector<16x128xf32>
    %c0_8 = arith.constant 0 : index
    %c0_9 = arith.constant 0 : index
    %27 = vector.load %arg3[%c0_8, %c0_9] : memref<16x128xf32, #tpu.memory_space<vmem>>, vector<16x128xf32>
    tpu.vector_store %arg3[%c0_8, %c0_9], %22 {strides = array<i32>} : memref<16x128xf32, #tpu.memory_space<vmem>>, vector<16x128xf32>,
    %c0_10 = arith.constant 0 : index
    %c0_11 = arith.constant 0 : index
    %28 = vector.load %arg4[%c0_10, %c0_11] : memref<16x128xf32, #tpu.memory_space<vmem>>, vector<16x128xf32>
    tpu.vector_store %arg4[%c0_10, %c0_11], %26 {strides = array<i32>} : memref<16x128xf32, #tpu.memory_space<vmem>>, vector<16x128xf32>,
    return
  }
  func.func @transform_0(%arg0: i32) -> (i32, i32) {
    %c0_i32 = arith.constant 0 : i32
    %c0_i32_0 = arith.constant 0 : i32
    return %arg0, %c0_i32 : i32, i32
  }
  func.func @transform_1(%arg0: i32) -> (i32, i32) {
    %c0_i32 = arith.constant 0 : i32
    %c0_i32_0 = arith.constant 0 : i32
    return %arg0, %c0_i32 : i32, i32
  }
  func.func @transform_2(%arg0: i32) -> (i32, i32) {
    %c0_i32 = arith.constant 0 : i32
    %c0_i32_0 = arith.constant 0 : i32
    return %arg0, %c0_i32 : i32, i32
  }
  func.func @transform_3(%arg0: i32) -> (i32, i32) {
    %c0_i32 = arith.constant 0 : i32
    %c0_i32_0 = arith.constant 0 : i32
    return %arg0, %c0_i32 : i32, i32
  }
}

</mosaic_0001>

<bundles_post_ra>
// kernel: tpu_custom_call.1
= control target key start
LH: loop header
LB: loop body
LE: loop exit
PB: predicated region body
PF: predicated region fallthrough
CT: control target
= control target key end

     0   :  { %9 = vsyncpa [#allocation3], 0  ;;  %s281_s0 = inlined_call_operand.hbm [shape: f32[16,128], index: 0, kind: input, shape index: {}]   ;;  %s282_s1 = inlined_call_operand.hbm [shape: f32[16,128], index: 1, kind: input, shape index: {}]   ;;  %s283_s2 = inlined_call_operand.hbm [shape: f32[16,128], index: 2, kind: output, shape index: {0}]   ;;  %s284_s3 = inlined_call_operand.hbm [shape: f32[16,128], index: 3, kind: output, shape index: {1}]  }
   0x1   :  { %10 = vsyncpa [#allocation6], 0 }
   0x2   :  { %11 = vsyncpa [#allocation4], 0 }
   0x3   :  { %12 = vsyncpa [#allocation9], 0  ;;  %s231_s12 = smov [#allocation2]  }
   0x4   :  { %s18_s13 = sshll.u32 %s231_s12, 4  ;;  %s19_s13 = int_to_ptr.vmem [resolvable:$true] %s18_s13 }
   0x5   :  { %s151_s14 = scalar_lea.vmem %s19_s13, 256  ;;  %p156_p1 = scmp.lt.s32.totalorder %s19_s13, %s19_s13 }
   0x6   :  { %p152_p0 = scmp.ne.s32.totalorder %s19_s13, %s151_s14  ;;  %p157_p2 = scmp.lt.s32.totalorder %s151_s14, %s151_s14 }
   0x8   :  { %p158_p3 = por %p157_p2, %p156_p1 }
   0xa   :  { %p159_p4 = pnand %p158_p3, %p152_p0 }
   0xc   :  { %162 = shalt.err (!%p159_p4)
}
   0xd   :  { %s232_s15 = smov 128   ;;  %s233_s16 = smov 8  }
   0xe   :  { %24 = dma.hbm_to_vmem [thread:$0]  %s281_s0, 256, %s19_s13, [#allocation3], %s232_s15, %s232_s15, %s233_s16  }
   0xf   :  { %s234_s19 = smov [#allocation5]  }
  0x10   :  { %s30_s20 = sshll.u32 %s234_s19, 4  ;;  %s31_s20 = int_to_ptr.vmem [resolvable:$true] %s30_s20 }
  0x11   :  { %s171_s21 = scalar_lea.vmem %s31_s20, 256  ;;  %p176_p6 = scmp.lt.s32.totalorder %s31_s20, %s31_s20 }
  0x12   :  { %p172_p5 = scmp.ne.s32.totalorder %s31_s20, %s171_s21  ;;  %p177_p7 = scmp.lt.s32.totalorder %s171_s21, %s171_s21 }
  0x14   :  { %p178_p8 = por %p177_p7, %p176_p6 }
  0x16   :  { %p179_p9 = pnand %p178_p8, %p172_p5 }
  0x18   :  { %182 = shalt.err (!%p179_p9)
}
  0x19   :  { %36 = dma.hbm_to_vmem [thread:$0]  %s282_s1, 256, %s31_s20, [#allocation6], %s232_s15, %s232_s15, %s233_s16  }
  0x1a   :  { %223 = dma.done.wait [#allocation3], 256  }
  0x1b   :  { %224 = vsyncadd [#allocation3], 4294967040 }
  0x1c   :  { %225 = dma.done.wait [#allocation6], 256  }
  0x1d   :  { %226 = vsyncadd [#allocation6], 4294967040  ;;  %v45_v0 = vld [vmem:[#allocation5] sm:$0xff]  ;;  %v46_v2 = vld [vmem:[#allocation5 + $0x8] sm:$0xff]  ;;  %s235_s0 = smov [#allocation7]   ;;  %s236_s24 = smov [#allocation8]  }
  0x1e   :  { %v47_v1 = vmax.f32 %v45_v0, 1.1754944e-38  ;;  %v48_v3 = vmax.f32 %v46_v2, 1.1754944e-38  ;;  %v43_v4 = vld [vmem:[#allocation2] sm:$0xff]  ;;  %v44_v5 = vld [vmem:[#allocation2 + $0x8] sm:$0xff]  ;;  %s96_s1 = sshll.u32 %s235_s0, 4  ;;  %s108_s25 = sshll.u32 %s236_s24, 4  ;;  %s97_s1 = int_to_ptr.vmem [resolvable:$true] %s96_s1  ;;  %s109_s25 = int_to_ptr.vmem [resolvable:$true] %s108_s25 }
  0x1f   :  { %s183_s26 = scalar_lea.vmem %s97_s1, 256  ;;  %p188_p11 = scmp.lt.s32.totalorder %s97_s1, %s97_s1 }
  0x20   :  { %131 = vrsqrt.f32 %v47_v1  ;;  %p184_p10 = scmp.ne.s32.totalorder %s97_s1, %s183_s26  ;;  %p189_p12 = scmp.lt.s32.totalorder %s183_s26, %s183_s26 }
  0x21   :  { %133 = vrsqrt.f32 %v48_v3 }
  0x22   :  { %p190_p13 = por %p189_p12, %p188_p11 }
  0x24   :  { %p191_p0 = pnand %p190_p13, %p184_p10 }
  0x2d   :  { %v132_v6 = vpop.eup %131 }
  0x2e   :  { %v134_v7 = vpop.eup %133  ;;  %v53_v8 = vmul.f32 %v132_v6, %v43_v4  ;;  %v51_v22 = vmul.f32 %v132_v6, %v45_v0 }
  0x2f   :  { %v54_v9 = vmul.f32 %v134_v7, %v44_v5  ;;  %v52_v25 = vmul.f32 %v134_v7, %v46_v2 }
  0x30   :  { %v55_v10 = vmul.f32 -0.5, %v53_v8  ;;  %v65_v11 = vmul.f32 0.70710677, %v53_v8 }
  0x31   :  { %v56_v12 = vmul.f32 -0.5, %v54_v9  ;;  %v66_v13 = vmul.f32 0.70710677, %v54_v9 }
  0x32   :  { %v57_v14 = vmul.f32 %v55_v10, %v53_v8  ;;  %135 = verf.f32 %v65_v11 }
  0x33   :  { %v58_v15 = vmul.f32 %v56_v12, %v54_v9  ;;  %137 = verf.f32 %v66_v13 }
  0x34   :  { %v59_v16 = vmul.f32 1.442695, %v57_v14 }
  0x35   :  { %v61_v17 = vmul.f32 1.442695, %v58_v15 }
  0x36   :  { %139 = vpow2.f32 %v59_v16 }
  0x37   :  { %141 = vpow2.f32 %v61_v17 }
  0x3f   :  { %v136_v18 = vpop.eup %135 }
  0x40   :  { %v138_v19 = vpop.eup %137  ;;  %v69_v20 = vadd.f32 1.0, %v136_v18 }
  0x41   :  { %v70_v21 = vadd.f32 1.0, %v138_v19 }
  0x42   :  { %v71_v23 = vmul.f32 0.5, %v69_v20 }
  0x43   :  { %v140_v24 = vpop.eup %139  ;;  %v72_v26 = vmul.f32 0.5, %v70_v21 }
  0x44   :  { %v142_v27 = vpop.eup %141  ;;  %v63_v28 = vmul.f32 0.3989423, %v140_v24  ;;  %v73_v29 = vmul.f32 %v71_v23, %v43_v4  ;;  %v83_v37 = vmul.f32 %v71_v23, %v45_v0 }
  0x45   :  { %v64_v30 = vmul.f32 0.3989423, %v142_v27  ;;  %v74_v31 = vmul.f32 %v72_v26, %v44_v5  ;;  %v84_v39 = vmul.f32 %v72_v26, %v46_v2 }
  0x46   :  { %v75_v32 = vmul.f32 %v63_v28, %v51_v22 }
  0x47   :  { %v76_v33 = vmul.f32 %v64_v30, %v52_v25 }
  0x48   :  { %v77_v34 = vadd.f32 %v75_v32, %v73_v29 }
  0x49   :  { %v78_v35 = vadd.f32 %v76_v33, %v74_v31 }
  0x4a   :  { %87 = vst [vmem:[#allocation7] sm:$0xff] %v77_v34  ;;  %v79_v36 = vsub.f32 %v43_v4, %v77_v34 }
  0x4b   :  { %88 = vst [vmem:[#allocation7 + $0x8] sm:$0xff] %v78_v35  ;;  %v80_v38 = vsub.f32 %v44_v5, %v78_v35 }
  0x4c   :  { %v81_v40 = vmul.f32 %v79_v36, %v77_v34 }
  0x4d   :  { %194 = shalt.err (!%p191_p0)
}
  0x4e   :  { %102 = dma.vmem_to_hbm [thread:$0]  %s97_s1, 256, %s283_s2, [#allocation4], %s232_s15, %s232_s15, %s233_s16   ;;  %v82_v41 = vmul.f32 %v80_v38, %v78_v35  ;;  %v85_v42 = vadd.f32 %v83_v37, %v81_v40 }
  0x4f   :  { %s203_s29 = scalar_lea.vmem %s109_s25, 256  ;;  %p208_p2 = scmp.lt.s32.totalorder %s109_s25, %s109_s25 }
  0x50   :  { %v86_v43 = vadd.f32 %v84_v39, %v82_v41  ;;  %89 = vst [vmem:[#allocation8] sm:$0xff] %v85_v42  ;;  %p204_p1 = scmp.ne.s32.totalorder %s109_s25, %s203_s29  ;;  %p209_p3 = scmp.lt.s32.totalorder %s203_s29, %s203_s29 }
  0x52   :  { %90 = vst [vmem:[#allocation8 + $0x8] sm:$0xff] %v86_v43  ;;  %p210_p4 = por %p209_p3, %p208_p2 }
  0x54   :  { %p211_p5 = pnand %p210_p4, %p204_p1 }
  0x56   :  { %214 = shalt.err (!%p211_p5)
}
  0x57   :  { %114 = dma.vmem_to_hbm [thread:$0]  %s109_s25, 256, %s284_s3, [#allocation9], %s232_s15, %s232_s15, %s233_s16  }
  0x58   :  { %227 = dma.done.wait [#allocation4], 256  }
  0x59   :  { %228 = vsyncadd [#allocation4], 4294967040 }
  0x5a   :  { %229 = dma.done.wait [#allocation9], 256  }
  0x5b   :  { %230 = vsyncadd [#allocation9], 4294967040 }
  0x5c   :  { %121 = vsyncpa [#allocation3], 1 }
  0x5d   :  { %122 = vsyncpa [#allocation6], 1 }
  0x5e   :  { %123 = vsyncpa [#allocation4], 1 }
  0x5f   :  { %124 = vsyncpa [#allocation9], 1 }

</bundles_post_ra>
